<compile_context>
chip_gen: v7x
topology: tpu7x:2x2x1
jax: 0.10.0
libtpu: 0.0.40
codegen_flags: <defaults>
</compile_context>

<pallas_src>
import jax
import jax.numpy as jnp
from jax.experimental import pallas as pl
from jax.experimental.pallas import tpu as pltpu


_TARGET_TILE_BYTES = 8 * 1024 * 1024    # ~8 MiB of model-output payload per grid step
_VMEM_BUDGET_BYTES = 24 * 1024 * 1024   # double-buffered in+out budget (headroom under 32 MiB)
_MIN_PALLAS_ELEMS = 1 << 14             # below this, plain XLA fusion beats a pallas_call


def _ensemble_kernel(w_ref, x_ref, o_ref):
    # w_ref: (num_models,)        softmax-normalized weights, SMEM (resident for whole call)
    # x_ref: (num_models, TR, 128) model outputs, dense (8,128) tiles in VMEM
    # o_ref: (TR, 128)             f32 weighted sum, dense lane+sublane store
    num_models = x_ref.shape[0]
    # num_models is tiny (a handful of models) -> static unroll; each (TR,128)
    # slab is cast to f32 exactly once and accumulated in f32 on the VPU.
    acc = x_ref[0].astype(jnp.float32) * w_ref[0]
    for m in range(1, num_models):
        acc = acc + x_ref[m].astype(jnp.float32) * w_ref[m]
    o_ref[...] = acc.astype(o_ref.dtype)


def _pick_tile_rows(rows, num_models, dtype, tile_rows):
    """Rows of 128 lanes per grid step. Must be a multiple of 8 or == rows."""
    if tile_rows is not None:
        tr = min(int(tile_rows), rows)
        if tr != rows:
            tr = max(8, (tr // 8) * 8)
        return tr
    if rows <= 16:
        return rows                                  # single full-extent block (always legal)
    itemsize = jnp.dtype(dtype).itemsize
    # ~8 MiB of input per step amortizes the ~0.35 us fixed per-step overhead.
    target = max(8, (_TARGET_TILE_BYTES // (num_models * 128 * itemsize) // 8) * 8)
    # Keep >= 2 grid steps: shards the "parallel" batch axis across both v7x
    # TensorCores and keeps the input/output DMA pipeline overlapped.
    half = max(8, ((rows + 1) // 2 // 8) * 8)
    # Double-buffered (input + f32 output) must fit the VMEM budget.
    per_row_bytes = 128 * (num_models * itemsize + 4)
    vmem_cap = max(8, (_VMEM_BUDGET_BYTES // (2 * per_row_bytes) // 8) * 8)
    return min(target, half, vmem_cap)


def _ensemble_pallas(weights, stacked_outputs, *, tile_rows=None):
    """weights: (num_models,) f32 softmax-normalized.
    stacked_outputs: (num_models, batch) with batch % 128 == 0. Returns (batch,) f32-promoted."""
    num_models, batch = stacked_outputs.shape
    assert batch % 128 == 0, "pallas path requires batch divisible by 128"
    rows = batch // 128
    out_dtype = jnp.promote_types(jnp.float32, stacked_outputs.dtype)

    # Free row-major metadata reshape: batch lands dense on (sublane, lane).
    x3 = stacked_outputs.reshape(num_models, rows, 128)

    tr = _pick_tile_rows(rows, num_models, stacked_outputs.dtype, tile_rows)
    grid = (pl.cdiv(rows, tr),)   # partial last block is fine: op is elementwise,
                                  # OOB output rows are masked on store.

    out = pl.pallas_call(
        _ensemble_kernel,
        out_shape=jax.ShapeDtypeStruct((rows, 128), out_dtype),
        grid=grid,
        in_specs=[
            # Normalized weights: tiny array resident in SMEM for the whole call
            # (constant block -> fetched once; equivalent to scalar prefetch here).
            pl.BlockSpec(memory_space=pltpu.MemorySpace.SMEM),
            # Model outputs: dense (num_models, TR, 128) tiles.
            pl.BlockSpec((num_models, tr, 128), lambda i: (0, i, 0)),
        ],
        out_specs=pl.BlockSpec((tr, 128), lambda i: (i, 0)),
        compiler_params=pltpu.CompilerParams(
            dimension_semantics=("parallel",),       # shard batch grid across TCs (v7x)
            vmem_limit_bytes=32 * 1024 * 1024,
        ),
    )(weights, x3)
    return out.reshape(batch)                        # free metadata reshape


def trainable_ensemble_forward_stacked(raw_weights, stacked_outputs, *,
                                       force_pallas=False, tile_rows=None):
    """Preferred (hot-path) layout: stacked_outputs is (num_models, batch).
    No transpose and, for batch % 128 == 0, no padding — zero extra HBM traffic."""
    num_models, batch = stacked_outputs.shape
    weights = jax.nn.softmax(raw_weights.astype(jnp.float32), axis=0)
    out_dtype = jnp.promote_types(jnp.float32, stacked_outputs.dtype)

    aligned = (batch % 128 == 0)
    small = batch * num_models < _MIN_PALLAS_ELEMS

    if aligned and (force_pallas or not small):
        return _ensemble_pallas(weights, stacked_outputs, tile_rows=tile_rows)
    if force_pallas:
        # Ragged batch: pad the lane axis up to a multiple of 128.  This is one
        # extra HBM pass over the inputs; aligned batches avoid it entirely.
        padded = pl.cdiv(batch, 128) * 128
        x = jnp.pad(stacked_outputs, ((0, 0), (0, padded - batch)))
        return _ensemble_pallas(weights, x, tile_rows=tile_rows)[:batch]
    # Tiny or lane-ragged batches: one fused XLA pass is already bandwidth-optimal.
    return jnp.sum(weights[:, None] * stacked_outputs.astype(out_dtype), axis=0)


def trainable_ensemble_forward(raw_weights, model_outputs, *,
                               force_pallas=False, tile_rows=None):
    """Matches the PyTorch module: model_outputs is (batch, num_models), returns (batch,).
    NOTE: this layout needs a transpose (a full HBM round trip) before the kernel;
    producers that can emit (num_models, batch) should call
    trainable_ensemble_forward_stacked instead and skip it."""
    batch, num_models = model_outputs.shape
    weights = jax.nn.softmax(raw_weights.astype(jnp.float32), axis=0)
    out_dtype = jnp.promote_types(jnp.float32, model_outputs.dtype)

    small = batch * num_models < _MIN_PALLAS_ELEMS
    if (small or batch % 128 != 0) and not force_pallas:
        # Tiny / ragged: let XLA fuse multiply + reduce in a single pass.
        return jnp.sum(weights * model_outputs.astype(out_dtype), axis=1)

    stacked = model_outputs.T
    return trainable_ensemble_forward_stacked(raw_weights, stacked,
                                              force_pallas=force_pallas,
                                              tile_rows=tile_rows)


if __name__ == "__main__":
    num_models = 4

    # nn.Parameter(torch.ones(num_models)) equivalent.
    raw_weights = jnp.ones((num_models,), dtype=jnp.float32)

    key = jax.random.PRNGKey(0)
    k0, k1, k2 = jax.random.split(key, 3)

    def ref_fn(w_raw, x_batch_major):
        w = jax.nn.softmax(w_raw.astype(jnp.float32), axis=0)
        return jnp.sum(w * x_batch_major.astype(jnp.float32), axis=1)

    # 1) Batch-major entry (module-compatible), 128-aligned batch, pallas path.
    batch1 = 256
    x1 = jax.random.normal(k0, (batch1, num_models), dtype=jnp.float32)
    out1 = trainable_ensemble_forward(raw_weights, x1, force_pallas=True)
    out1 = jax.block_until_ready(out1)
    assert out1.shape == (batch1,)
    assert jnp.allclose(out1, ref_fn(raw_weights, x1), atol=1e-5, rtol=1e-5)

    # 2) Stacked (hot-path) entry, bf16 inputs, small tile override -> 2-step grid.
    batch2 = 2048
    x2_stacked = jax.random.normal(k1, (num_models, batch2), dtype=jnp.float32).astype(jnp.bfloat16)
    out2 = trainable_ensemble_forward_stacked(raw_weights, x2_stacked,
                                              force_pallas=True, tile_rows=8)
    out2 = jax.block_until_ready(out2)
    assert out2.shape == (batch2,)
    assert out2.dtype == jnp.float32            # PyTorch-style promotion (f32 * bf16 -> f32)
    ref2 = jnp.sum(jax.nn.softmax(raw_weights)[:, None] * x2_stacked.astype(jnp.float32), axis=0)
    assert jnp.allclose(out2, ref2, atol=5e-2, rtol=5e-2)

    # 3) Ragged batch (not a multiple of 128): exercises the padded fallback path.
    batch3 = 200
    x3 = jax.random.normal(k2, (batch3, num_models), dtype=jnp.float32)
    out3 = trainable_ensemble_forward(raw_weights, x3, force_pallas=True)
    out3 = jax.block_until_ready(out3)
    assert out3.shape == (batch3,)
    assert jnp.allclose(out3, ref_fn(raw_weights, x3), atol=1e-5, rtol=1e-5)

    print("KERNEL_OK")
</pallas_src>

<mosaic_0001>
module attributes {stable_mosaic.version = 11 : i64} {
  func.func @_ensemble_kernel(%arg0: i32, %arg1: memref<4xf32, #tpu.memory_space<smem>>, %arg2: memref<4x2x128xf32, #tpu.memory_space<vmem>>, %arg3: memref<2x128xf32, #tpu.memory_space<vmem>>) attributes {dimension_semantics = [#tpu.dimension_semantics<parallel>], iteration_bounds = array<i64: 1>, scalar_prefetch = 0 : i64, scratch_operands = 0 : i64, tpu.core_type = #tpu.core_type<tc>, window_params = [{transform_indices = @transform_0, window_bounds = array<i64: 4>}, {transform_indices = @transform_1, window_bounds = array<i64: 4, 2, 128>}, {transform_indices = @transform_2, window_bounds = array<i64: 2, 128>}]} {
    %c0 = arith.constant 0 : index
    %c0_0 = arith.constant 0 : index
    %c0_1 = arith.constant 0 : index
    %0 = vector.load %arg2[%c0, %c0_0, %c0_1] : memref<4x2x128xf32, #tpu.memory_space<vmem>>, vector<1x2x128xf32>
    %1 = vector.shape_cast %0 : vector<1x2x128xf32> to vector<2x128xf32>
    %c0_2 = arith.constant 0 : index
    %2 = memref.load %arg1[%c0_2] : memref<4xf32, #tpu.memory_space<smem>>
    %3 = vector.broadcast %2 : f32 to vector<2x128xf32>
    %4 = arith.mulf %1, %3 : vector<2x128xf32>
    %c1 = arith.constant 1 : index
    %c0_3 = arith.constant 0 : index
    %c0_4 = arith.constant 0 : index
    %5 = vector.load %arg2[%c1, %c0_3, %c0_4] : memref<4x2x128xf32, #tpu.memory_space<vmem>>, vector<1x2x128xf32>
    %6 = vector.shape_cast %5 : vector<1x2x128xf32> to vector<2x128xf32>
    %c1_5 = arith.constant 1 : index
    %7 = memref.load %arg1[%c1_5] : memref<4xf32, #tpu.memory_space<smem>>
    %8 = vector.broadcast %7 : f32 to vector<2x128xf32>
    %9 = arith.mulf %6, %8 : vector<2x128xf32>
    %10 = arith.addf %4, %9 : vector<2x128xf32>
    %c2 = arith.constant 2 : index
    %c0_6 = arith.constant 0 : index
    %c0_7 = arith.constant 0 : index
    %11 = vector.load %arg2[%c2, %c0_6, %c0_7] : memref<4x2x128xf32, #tpu.memory_space<vmem>>, vector<1x2x128xf32>
    %12 = vector.shape_cast %11 : vector<1x2x128xf32> to vector<2x128xf32>
    %c2_8 = arith.constant 2 : index
    %13 = memref.load %arg1[%c2_8] : memref<4xf32, #tpu.memory_space<smem>>
    %14 = vector.broadcast %13 : f32 to vector<2x128xf32>
    %15 = arith.mulf %12, %14 : vector<2x128xf32>
    %16 = arith.addf %10, %15 : vector<2x128xf32>
    %c3 = arith.constant 3 : index
    %c0_9 = arith.constant 0 : index
    %c0_10 = arith.constant 0 : index
    %17 = vector.load %arg2[%c3, %c0_9, %c0_10] : memref<4x2x128xf32, #tpu.memory_space<vmem>>, vector<1x2x128xf32>
    %18 = vector.shape_cast %17 : vector<1x2x128xf32> to vector<2x128xf32>
    %c3_11 = arith.constant 3 : index
    %19 = memref.load %arg1[%c3_11] : memref<4xf32, #tpu.memory_space<smem>>
    %20 = vector.broadcast %19 : f32 to vector<2x128xf32>
    %21 = arith.mulf %18, %20 : vector<2x128xf32>
    %22 = arith.addf %16, %21 : vector<2x128xf32>
    %c0_12 = arith.constant 0 : index
    %c0_13 = arith.constant 0 : index
    %23 = vector.load %arg3[%c0_12, %c0_13] : memref<2x128xf32, #tpu.memory_space<vmem>>, vector<2x128xf32>
    tpu.vector_store %arg3[%c0_12, %c0_13], %22 {strides = array<i32>} : memref<2x128xf32, #tpu.memory_space<vmem>>, vector<2x128xf32>,
    return
  }
  func.func @transform_0(%arg0: i32) -> i32 {
    %c0_i32 = arith.constant 0 : i32
    %c0_i32_0 = arith.constant 0 : i32
    return %c0_i32 : i32
  }
  func.func @transform_1(%arg0: i32) -> (i32, i32, i32) {
    %c0_i32 = arith.constant 0 : i32
    %c0_i32_0 = arith.constant 0 : i32
    %c0_i32_1 = arith.constant 0 : i32
    return %c0_i32, %arg0, %c0_i32_0 : i32, i32, i32
  }
  func.func @transform_2(%arg0: i32) -> (i32, i32) {
    %c0_i32 = arith.constant 0 : i32
    %c0_i32_0 = arith.constant 0 : i32
    return %arg0, %c0_i32 : i32, i32
  }
}

</mosaic_0001>

<bundles_post_ra>
// kernel: tpu_custom_call.1
= control target key start
LH: loop header
LB: loop body
LE: loop exit
PB: predicated region body
PF: predicated region fallthrough
CT: control target
= control target key end

     0   :  { %7 = vsyncpa [#allocation5], 0  ;;  %s200_s0 = inlined_call_operand.hbm [shape: f32[4], index: 0, kind: input, shape index: {}]   ;;  %s201_s1 = inlined_call_operand.hbm [shape: f32[4,2,128], index: 1, kind: input, shape index: {}]   ;;  %s202_s2 = inlined_call_operand.hbm [shape: f32[2,128], index: 2, kind: output, shape index: {}]  }
   0x1   :  { %8 = vsyncpa [#allocation3], 0 }
   0x2   :  { %9 = vsyncpa [#allocation4], 0  ;;  %s84_s11 = scalar_lea.hbm %s200_s0, 16 }
   0x3   :  { %p85_p0 = scmp.ne.s32.totalorder %s200_s0, %s84_s11  ;;  %p88_p1 = scmp.lt.u32.totalorder %s84_s11, %s200_s0 }
   0x5   :  { %p90_p2 = pnand %p88_p1, %p85_p0 }
   0x7   :  { %93 = shalt.err (!%p90_p2)
}
   0x8   :  { %s144_s16 = smov [#allocation2]   ;;  %s145_s19 = smov [#allocation6]  }
   0x9   :  { %17 = dma.hbm_to_smem %s200_s0, 16, %s144_s16, [#allocation5]  }
   0xa   :  { %s23_s20 = sshll.u32 %s145_s19, 4  ;;  %s94_s23 = scalar_lea.hbm %s201_s1, 128  ;;  %s24_s20 = int_to_ptr.vmem [resolvable:$true] %s23_s20 }
   0xb   :  { %p95_p3 = scmp.ne.s32.totalorder %s201_s1, %s94_s23  ;;  %p98_p4 = scmp.lt.u32.totalorder %s94_s23, %s201_s1 }
   0xd   :  { %p100_p5 = pnand %p98_p4, %p95_p3 }
   0xf   :  { %103 = shalt.err (!%p100_p5)
}
  0x10   :  { %s104_s28 = scalar_lea.vmem %s24_s20, 128  ;;  %p109_p7 = scmp.lt.s32.totalorder %s24_s20, %s24_s20 }
  0x11   :  { %p105_p6 = scmp.ne.s32.totalorder %s24_s20, %s104_s28  ;;  %p110_p8 = scmp.lt.s32.totalorder %s104_s28, %s104_s28 }
  0x13   :  { %p111_p9 = por %p110_p8, %p109_p7 }
  0x15   :  { %p112_p10 = pnand %p111_p9, %p105_p6 }
  0x17   :  { %115 = shalt.err (!%p112_p10)
}
  0x18   :  { %s146_s0 = smov 32   ;;  %s147_s29 = smov 2  }
  0x19   :  { %29 = dma.hbm_to_vmem [thread:$0]  %s201_s1, 128, %s24_s20, [#allocation3], %s146_s0, %s146_s0, %s147_s29  }
  0x1a   :  { %138 = dma.done.wait [#allocation5], 16  }
  0x1b   :  { %139 = vsyncadd [#allocation5], 4294967280 }
  0x1c   :  { %140 = dma.done.wait [#allocation3], 128  }
  0x1d   :  { %141 = vsyncadd [#allocation3], 4294967168 }
  0x1e   :  { %36 = sfence }
  0x1f   :  { %s38_s4 = sld [smem:[#allocation2]]  ;;  %s76_s5 = sld [smem:[#allocation2 + $0x1]]  ;;  %v37_v0 = vld [vmem:[#allocation6] sm:$0x3]  ;;  %v42_v1 = vld [vmem:[#allocation6 + $0x2] sm:$0x3] }
  0x20   :  { %s77_s6 = sld [smem:[#allocation2 + $0x2]]  ;;  %s78_s7 = sld [smem:[#allocation2 + $0x3]]  ;;  %v48_v2 = vld [vmem:[#allocation6 + $0x4] sm:$0x3]  ;;  %v54_v7 = vld [vmem:[#allocation6 + $0x6] sm:$0x3] }
  0x21   :  { %s148_s1 = smov [#allocation7]  }
  0x22   :  { %s66_s8 = sshll.u32 %s148_s1, 4  ;;  %s67_s8 = int_to_ptr.vmem [resolvable:$true] %s66_s8 }
  0x23   :  { %s116_s9 = scalar_lea.vmem %s67_s8, 32  ;;  %p121_p12 = scmp.lt.s32.totalorder %s67_s8, %s67_s8 }
  0x24   :  { %p117_p11 = scmp.ne.s32.totalorder %s67_s8, %s116_s9  ;;  %p122_p13 = scmp.lt.s32.totalorder %s116_s9, %s116_s9 }
  0x25   :  { %v39_v3 = vstv %s38_s4  ;;  %v44_v5 = vstv %s76_s5 }
  0x26   :  { %v40_v4 = vmul.f32 %v39_v3, %v37_v0  ;;  %v50_v6 = vstv %s77_s6  ;;  %v45_v8 = vmul.f32 %v44_v5, %v42_v1  ;;  %v56_v10 = vstv %s78_s7  ;;  %p123_p0 = por %p122_p13, %p121_p12 }
  0x27   :  { %v51_v9 = vmul.f32 %v50_v6, %v48_v2  ;;  %v57_v12 = vmul.f32 %v56_v10, %v54_v7 }
  0x28   :  { %v46_v11 = vadd.f32 %v45_v8, %v40_v4  ;;  %p124_p1 = pnand %p123_p0, %p117_p11 }
  0x2a   :  { %v52_v13 = vadd.f32 %v51_v9, %v46_v11 }
  0x2c   :  { %v58_v14 = vadd.f32 %v57_v12, %v52_v13 }
  0x2e   :  { %59 = vst [vmem:[#allocation7] sm:$0x3] %v58_v14 }
  0x2f   :  { %127 = shalt.err (!%p124_p1)
}
  0x30   :  { %s128_s12 = scalar_lea.hbm %s202_s2, 32 }
  0x31   :  { %p129_p2 = scmp.ne.s32.totalorder %s202_s2, %s128_s12  ;;  %p132_p3 = scmp.lt.u32.totalorder %s128_s12, %s202_s2 }
  0x33   :  { %p134_p4 = pnand %p132_p3, %p129_p2 }
  0x35   :  { %137 = shalt.err (!%p134_p4)
}
  0x36   :  { %69 = dma.vmem_to_hbm [thread:$0]  %s67_s8, 32, %s202_s2, [#allocation4]  }
  0x37   :  { %142 = dma.done.wait [#allocation4], 32  }
  0x38   :  { %143 = vsyncadd [#allocation4], 4294967264 }
  0x39   :  { %73 = vsyncpa [#allocation3], 1 }
  0x3a   :  { %74 = vsyncpa [#allocation4], 1 }
  0x3b   :  { %75 = vsyncpa [#allocation5], 1 }

</bundles_post_ra>
